<compile_context>
chip_gen: v7x
topology: tpu7x:2x2x1
jax: 0.10.0
libtpu: 0.0.40
codegen_flags: <defaults>
</compile_context>

<pallas_src>
import jax
import jax.numpy as jnp
from jax.experimental import pallas as pl
from jax.experimental.pallas import tpu as pltpu


def _round_up(x, m):
    return ((x + m - 1) // m) * m


def _vmem_capacity_bytes():
    try:
        info = pltpu.get_tpu_info()
        cap = getattr(info, "vmem_capacity_bytes", None)
        if cap:
            return int(cap)
    except Exception:
        pass
    return 64 << 20  # conservative default (v7x per-TensorCore VMEM)


# ----------------------------------------------------------------------------
# Kernel 1: row-tiled fused linear projections (+ optional inter-layer ELU)
# ----------------------------------------------------------------------------
def make_projection_kernel(apply_input_elu, HC):
    def kernel(x_ref, w_ref, b_ref, xl_ref, xr_ref):
        x = x_ref[...].astype(jnp.float32)                       # [TM, F_in]
        if apply_input_elu:
            x = jnp.where(x > 0, x, jnp.expm1(x))                # ELU(alpha=1)
        # single fused matmul for both projections: W = [W_l | W_r]
        y = jnp.dot(x, w_ref[...],
                    preferred_element_type=jnp.float32) + b_ref[...]  # [TM, 2*HC]
        xl_ref[...] = y[:, :HC]
        xr_ref[...] = y[:, HC:]
    return kernel


# ----------------------------------------------------------------------------
# Kernel 2: row-tiled GATv2 attention (per-channel lane-dense score slabs)
# ----------------------------------------------------------------------------
def make_attention_kernel(H, C, negative_slope=0.2):
    def kernel(att_ref, we_ref, xr_ref, xlt_ref, bias_ref, adj_ref, eattr_ref,
               out_ref):
        # att_ref  : SMEM [H*C]     attention vector (flattened heads)
        # we_ref   : SMEM [H*C]     lin_edge weights (edge_dim=1, no bias)
        # xr_ref   : VMEM [TM, H*C] target-side projections for this row block
        # xlt_ref  : VMEM [H*C, N]  source-side projections, lane-dense over N
        # bias_ref : VMEM [1, H*C]
        # adj_ref  : VMEM [TM, N]   adj[i, j] = 1 iff edge j -> i
        # eattr_ref: VMEM [TM, N]   scalar edge attribute
        # out_ref  : VMEM [TM, H*C]
        eattr = eattr_ref[...]                                   # [TM, N]
        xr = xr_ref[...]                                         # [TM, HC]
        # additive mask, computed once and reused by all heads
        mask_bias = jnp.where(adj_ref[...] > 0.0,
                              jnp.float32(0.0),
                              jnp.float32(-1e30))                # [TM, N]

        for h in range(H):
            # ---- scores: per-channel accumulation on [TM, N] slabs ----------
            s = mask_bias
            for c in range(C):
                hc = h * C + c
                att_c = att_ref[hc]                              # SMEM scalar
                we_c = we_ref[hc]                                # SMEM scalar
                xl_row = xlt_ref[hc:hc + 1, :]                   # [1, N] lane-dense
                xr_col = xr[:, hc:hc + 1]                        # [TM, 1]
                z = xr_col + xl_row + eattr * we_c               # [TM, N]
                z = jnp.maximum(z, negative_slope * z)           # LeakyReLU(0.2)
                s = s + att_c * z
            # ---- masked softmax over incoming edges (lane axis) -------------
            # self-loops guarantee a real row max; masked entries (-1e30)
            # underflow to exactly 0 after exp -> no second select needed.
            s_max = jnp.max(s, axis=1, keepdims=True)            # [TM, 1]
            p = jnp.exp(s - s_max)                               # [TM, N]
            denom = jnp.sum(p, axis=1, keepdims=True)            # [TM, 1]
            # (attention dropout p=0.1 is identity in eval mode)

            # ---- aggregate, then normalize the small [TM, C] result ---------
            xlt_h = xlt_ref[h * C:(h + 1) * C, :]                # [C, N]
            out_h = jax.lax.dot_general(
                p, xlt_h,
                dimension_numbers=(((1,), (1,)), ((), ())),
                preferred_element_type=jnp.float32)              # [TM, C]
            out_h = out_h * pl.reciprocal(denom, approx=True)    # EUP slot
            out_ref[:, h * C:(h + 1) * C] = (
                out_h + bias_ref[:, h * C:(h + 1) * C]).astype(out_ref.dtype)

    return kernel


# ----------------------------------------------------------------------------
# Tiling / VMEM budgeting (8,128)-padding aware
# ----------------------------------------------------------------------------
def _pick_tm(N, cap_bytes):
    """Row-block size: multiple of 8 dividing N, [TM, N] slab budget in VMEM."""
    if N <= 8 or N % 8 != 0:
        return N
    lane_n = _round_up(N, 128)
    # adj/eattr streams double-buffered + ~8 live [TM, N] f32 temporaries
    per_row = (2 * 2 + 8) * lane_n * 4
    cands = [d for d in range(8, min(N, 512) + 1, 8) if N % d == 0]
    # prefer >= 2 grid steps so the "parallel" axis can split across TensorCores
    pref = [d for d in cands if 2 * d <= N] or cands
    fits = [d for d in pref if d * per_row <= cap_bytes]
    return max(fits) if fits else min(cands)


# ----------------------------------------------------------------------------
# Wrapper: one GATv2 layer = projection pallas_call + tiled attention pallas_call
# ----------------------------------------------------------------------------
def gatv2_layer(x, params, adj, eattr, *, apply_input_elu, tm=None):
    N, f_in = x.shape
    H, C = params["att"].shape
    HC = H * C

    cap = _vmem_capacity_bytes()
    if tm is None:
        tm = _pick_tm(N, cap_bytes=int(0.30 * cap))
    assert N % tm == 0 and (tm % 8 == 0 or tm == N)
    grid = (N // tm,)

    # ---- stage 1: hoisted fused projections (+ inter-layer ELU) ------------
    w_fused = jnp.concatenate([params["W_l"], params["W_r"]], axis=1)   # [f_in, 2HC]
    b_fused = jnp.concatenate([params["b_l"], params["b_r"]], axis=1)   # [1, 2HC]

    xl, xr = pl.pallas_call(
        make_projection_kernel(apply_input_elu, HC),
        out_shape=(jax.ShapeDtypeStruct((N, HC), jnp.float32),
                   jax.ShapeDtypeStruct((N, HC), jnp.float32)),
        grid=grid,
        in_specs=[pl.BlockSpec((tm, f_in), lambda i: (i, 0)),
                  pl.BlockSpec((f_in, 2 * HC), lambda i: (0, 0)),
                  pl.BlockSpec((1, 2 * HC), lambda i: (0, 0))],
        out_specs=(pl.BlockSpec((tm, HC), lambda i: (i, 0)),
                   pl.BlockSpec((tm, HC), lambda i: (i, 0))),
        compiler_params=pltpu.CompilerParams(
            dimension_semantics=("parallel",)),
    )(x, w_fused, b_fused)

    # lane-dense-over-N source layout (wide last dim -> clean HBM/VMEM layout)
    xl_t = xl.T                                                   # [HC, N]
    att_flat = params["att"].reshape(-1).astype(jnp.float32)      # [HC]
    we_flat = params["W_e"].reshape(-1).astype(jnp.float32)       # [HC]

    # ---- stage 2: tiled attention ------------------------------------------
    flops = int(H * N * N * (7 * C + 2 * C + 5))
    transcendentals = int(H * (N * N + N))
    bytes_accessed = int(4 * (2 * N * N + 5 * N * HC))
    cost = pl.CostEstimate(flops=flops, transcendentals=transcendentals,
                           bytes_accessed=bytes_accessed)

    # padding-aware VMEM estimate for this call
    lane_n = _round_up(N, 128)
    sub_tm = _round_up(tm, 8)
    slab = sub_tm * lane_n * 4
    blk_hc = sub_tm * _round_up(HC, 128) * 4
    need = (2 * 2 * slab                                  # adj + eattr (double-buffered)
            + 2 * 2 * blk_hc                              # xr block + out block
            + 2 * _round_up(HC, 8) * lane_n * 4           # resident xl_t
            + 8 * slab)                                   # in-kernel temporaries
    vmem_limit = int(min(0.5 * cap, max(16 << 20, need + (8 << 20))))
    vmem_limit = max(vmem_limit, need + (2 << 20))

    out = pl.pallas_call(
        make_attention_kernel(H, C),
        out_shape=jax.ShapeDtypeStruct((N, HC), jnp.float32),
        grid=grid,
        in_specs=[pl.BlockSpec(memory_space=pltpu.MemorySpace.SMEM),  # att
                  pl.BlockSpec(memory_space=pltpu.MemorySpace.SMEM),  # lin_edge W
                  pl.BlockSpec((tm, HC), lambda i: (i, 0)),           # xr row block
                  pl.BlockSpec((HC, N), lambda i: (0, 0)),            # xl_t (resident)
                  pl.BlockSpec((1, HC), lambda i: (0, 0)),            # bias
                  pl.BlockSpec((tm, N), lambda i: (i, 0)),            # adj rows
                  pl.BlockSpec((tm, N), lambda i: (i, 0))],           # edge attrs
        out_specs=pl.BlockSpec((tm, HC), lambda i: (i, 0)),
        compiler_params=pltpu.CompilerParams(
            dimension_semantics=("parallel",),
            vmem_limit_bytes=vmem_limit),
        cost_estimate=cost,
    )(att_flat, we_flat, xr, xl_t, params["bias"], adj, eattr)
    return out


# ----------------------------------------------------------------------------
# Glue: dense graph construction (remove/add self-loops, fill_value='mean')
# ----------------------------------------------------------------------------
def build_dense_graph(edge_index, edge_attr, num_nodes):
    src = edge_index[0]
    dst = edge_index[1]
    ea = edge_attr[:, 0].astype(jnp.float32)

    # remove existing self-loops
    keep = src != dst
    keepf = keep.astype(jnp.float32)

    # self-loop edge_attr = mean of attrs of edges pointing to each node
    counts = jnp.zeros((num_nodes,), jnp.float32).at[dst].add(keepf)
    sums = jnp.zeros((num_nodes,), jnp.float32).at[dst].add(ea * keepf)
    loop_attr = jnp.where(counts > 0, sums / jnp.maximum(counts, 1.0), 0.0)

    # NOTE: assumes no duplicate edges (adj uses max, eattr uses add).
    adj = jnp.zeros((num_nodes, num_nodes), jnp.float32).at[dst, src].max(keepf)
    eattr = jnp.zeros((num_nodes, num_nodes), jnp.float32).at[dst, src].add(ea * keepf)

    diag = jnp.arange(num_nodes)
    adj = adj.at[diag, diag].set(1.0)
    eattr = eattr.at[diag, diag].set(loop_attr)
    return adj, eattr


# ----------------------------------------------------------------------------
# Parameter init (deterministic, glorot-style; shapes match GATv2Conv)
# ----------------------------------------------------------------------------
def init_gatv2_conv_params(key, in_channels, out_channels, heads):
    hc = heads * out_channels
    ks = jax.random.split(key, 6)

    def glorot(k, shape):
        fan_in, fan_out = shape[0], shape[-1]
        lim = jnp.sqrt(6.0 / (fan_in + fan_out))
        return jax.random.uniform(k, shape, jnp.float32, -lim, lim)

    return {
        "W_l": glorot(ks[0], (in_channels, hc)),
        "b_l": jnp.zeros((1, hc), jnp.float32),
        "W_r": glorot(ks[1], (in_channels, hc)),
        "b_r": jnp.zeros((1, hc), jnp.float32),
        "W_e": glorot(ks[2], (1, hc)),                 # lin_edge (edge_dim=1, no bias)
        "att": glorot(ks[3], (heads, out_channels)),   # attention vector per head
        "bias": jnp.zeros((1, hc), jnp.float32),       # final bias (concat=True)
    }


def gatv2_model(x, edge_index, edge_attr, params1, params2, *, tm=None):
    N = x.shape[0]
    adj, eattr = build_dense_graph(edge_index, edge_attr, N)
    h = gatv2_layer(x, params1, adj, eattr, apply_input_elu=False, tm=tm)   # conv1
    out = gatv2_layer(h, params2, adj, eattr, apply_input_elu=True, tm=tm)  # elu -> conv2
    return out


# ----------------------------------------------------------------------------
if __name__ == "__main__":
    N = 16                 # number of nodes
    in_channels = 8
    hidden_channels = 16
    out_channels = 8
    heads = 2

    key = jax.random.PRNGKey(0)
    kx, ke, kp1, kp2 = jax.random.split(key, 4)

    # node features
    x = jax.random.normal(kx, (N, in_channels), jnp.float32)

    # directed graph without self-loops / duplicates: i -> i+1, i -> i+3 (mod N)
    src = jnp.concatenate([jnp.arange(N), jnp.arange(N)]).astype(jnp.int32)
    dst = jnp.concatenate([(jnp.arange(N) + 1) % N, (jnp.arange(N) + 3) % N]).astype(jnp.int32)
    edge_index = jnp.stack([src, dst], axis=0)                        # [2, E]
    edge_attr = jax.random.normal(ke, (edge_index.shape[1], 1), jnp.float32)

    params1 = init_gatv2_conv_params(kp1, in_channels, hidden_channels, heads)
    params2 = init_gatv2_conv_params(kp2, hidden_channels * heads, out_channels, heads=1)

    # auto TM picks 8 here -> 2-step grid per layer (exercises the tiled path)
    out = gatv2_model(x, edge_index, edge_attr, params1, params2)
    out = jax.block_until_ready(out)

    assert out.shape == (N, out_channels), out.shape
    assert bool(jnp.all(jnp.isfinite(out)))
    print("KERNEL_OK")
</pallas_src>

<mosaic_0001>
module attributes {stable_mosaic.version = 11 : i64} {
  func.func @kernel(%arg0: i32, %arg1: memref<8x8xf32, #tpu.memory_space<vmem>>, %arg2: memref<8x64xf32, #tpu.memory_space<vmem>>, %arg3: memref<1x64xf32, #tpu.memory_space<vmem>>, %arg4: memref<8x32xf32, #tpu.memory_space<vmem>>, %arg5: memref<8x32xf32, #tpu.memory_space<vmem>>) attributes {dimension_semantics = [#tpu.dimension_semantics<parallel>], iteration_bounds = array<i64: 2>, scalar_prefetch = 0 : i64, scratch_operands = 0 : i64, tpu.core_type = #tpu.core_type<tc>, window_params = [{transform_indices = @transform_0, window_bounds = array<i64: 8, 8>}, {pipeline_mode = #tpu.pipeline_mode<synchronous>, transform_indices = @transform_1, window_bounds = array<i64: 8, 64>}, {pipeline_mode = #tpu.pipeline_mode<synchronous>, transform_indices = @transform_2, window_bounds = array<i64: 1, 64>}, {transform_indices = @transform_3, window_bounds = array<i64: 8, 32>}, {transform_indices = @transform_4, window_bounds = array<i64: 8, 32>}]} {
    %c0 = arith.constant 0 : index
    %c0_0 = arith.constant 0 : index
    %0 = vector.load %arg1[%c0, %c0_0] : memref<8x8xf32, #tpu.memory_space<vmem>>, vector<8x8xf32>
    %c0_1 = arith.constant 0 : index
    %c0_2 = arith.constant 0 : index
    %1 = vector.load %arg2[%c0_1, %c0_2] : memref<8x64xf32, #tpu.memory_space<vmem>>, vector<8x64xf32>
    %cst = arith.constant dense<0.000000e+00> : vector<8x64xf32>
    %2 = tpu.matmul %0, %1, %cst {dimension_numbers = #tpu.dot_dimension_numbers<[1], [0], [0], [1], [0, 0, 1, 1], [], []>} : vector<8x8xf32>, vector<8x64xf32>, vector<8x64xf32> -> vector<8x64xf32>
    %c0_3 = arith.constant 0 : index
    %c0_4 = arith.constant 0 : index
    %3 = vector.load %arg3[%c0_3, %c0_4] : memref<1x64xf32, #tpu.memory_space<vmem>>, vector<1x64xf32>
    %4 = vector.broadcast %3 : vector<1x64xf32> to vector<8x64xf32>
    %5 = arith.addf %2, %4 : vector<8x64xf32>
    %6 = vector.extract_strided_slice %5 {offsets = [0, 0], sizes = [8, 32], strides = [1, 1]} : vector<8x64xf32> to vector<8x32xf32>
    %c0_5 = arith.constant 0 : index
    %c0_6 = arith.constant 0 : index
    %7 = vector.load %arg4[%c0_5, %c0_6] : memref<8x32xf32, #tpu.memory_space<vmem>>, vector<8x32xf32>
    tpu.vector_store %arg4[%c0_5, %c0_6], %6 {strides = array<i32>} : memref<8x32xf32, #tpu.memory_space<vmem>>, vector<8x32xf32>,
    %8 = vector.extract_strided_slice %5 {offsets = [0, 32], sizes = [8, 32], strides = [1, 1]} : vector<8x64xf32> to vector<8x32xf32>
    %c0_7 = arith.constant 0 : index
    %c0_8 = arith.constant 0 : index
    %9 = vector.load %arg5[%c0_7, %c0_8] : memref<8x32xf32, #tpu.memory_space<vmem>>, vector<8x32xf32>
    tpu.vector_store %arg5[%c0_7, %c0_8], %8 {strides = array<i32>} : memref<8x32xf32, #tpu.memory_space<vmem>>, vector<8x32xf32>,
    return
  }
  func.func @transform_0(%arg0: i32) -> (i32, i32) {
    %c0_i32 = arith.constant 0 : i32
    %c0_i32_0 = arith.constant 0 : i32
    return %arg0, %c0_i32 : i32, i32
  }
  func.func @transform_1(%arg0: i32) -> (i32, i32) {
    %c0_i32 = arith.constant 0 : i32
    %c0_i32_0 = arith.constant 0 : i32
    %c0_i32_1 = arith.constant 0 : i32
    return %c0_i32, %c0_i32_0 : i32, i32
  }
  func.func @transform_2(%arg0: i32) -> (i32, i32) {
    %c0_i32 = arith.constant 0 : i32
    %c0_i32_0 = arith.constant 0 : i32
    %c0_i32_1 = arith.constant 0 : i32
    return %c0_i32, %c0_i32_0 : i32, i32
  }
  func.func @transform_3(%arg0: i32) -> (i32, i32) {
    %c0_i32 = arith.constant 0 : i32
    %c0_i32_0 = arith.constant 0 : i32
    return %arg0, %c0_i32 : i32, i32
  }
  func.func @transform_4(%arg0: i32) -> (i32, i32) {
    %c0_i32 = arith.constant 0 : i32
    %c0_i32_0 = arith.constant 0 : i32
    return %arg0, %c0_i32 : i32, i32
  }
}

</mosaic_0001>

<bundles_post_ra>
// kernel: tpu_custom_call.1
= control target key start
LH: loop header
LB: loop body
LE: loop exit
PB: predicated region body
PF: predicated region fallthrough
CT: control target
= control target key end

     0   :  { %10 = vsyncpa [#allocation3], 0  ;;  %s761_s0 = inlined_call_operand.vmem [shape: f32[16,8], index: 0, kind: input, shape index: {}]   ;;  %s762_s1 = inlined_call_operand.vmem [shape: f32[8,64], index: 1, kind: input, shape index: {}]   ;;  %s763_s2 = inlined_call_operand.vmem [shape: f32[1,64], index: 2, kind: input, shape index: {}]   ;;  %s764_s3 = inlined_call_operand.hbm [shape: f32[16,32], index: 3, kind: output, shape index: {0}]   ;;  %s765_s4 = inlined_call_operand.hbm [shape: f32[16,32], index: 4, kind: output, shape index: {1}]  }
   0x1   :  { %12 = vsyncpa [#allocation3 + $0x1], 0 }
   0x2   :  { %13 = vsyncpa [#allocation5], 0 }
   0x3   :  { %15 = vsyncpa [#allocation5 + $0x1], 0  ;;  %s612_s15 = smov 0   ;;  %s614_s16 = smov 0  }
   0x4   :  { %s616_s17 = smov 0   ;;  %s618_s18 = smov 0  }
   0x5 LB: > { %s633_s19 = sadd.s32 4294967295, %s580_s18   ;;  %s417_s20 = sadd.s32 4294967294, %s580_s18   ;;  %s580_s18 = sphi %s618_s18, %s771_s18   ;;  %s576_s17 = sphi %s616_s17, %s770_s17   ;;  %s572_s16 = sphi %s614_s16, %s769_s16   ;;  %s568_s15 = sphi %s612_s15, %s768_s15  }
   0x6   : > { %s637_s21 = sadd.s32 1, %s580_s18   ;;  %s96_s22 = sadd.s32 1, %s576_s17 }
   0x7   : > { %s93_s23 = ssub.s32 %s580_s18, %s637_s21  ;;  %p106_p0 = scmp.ne.s32.totalorder %s576_s17, %s572_s16 }
   0x8   : > { %p94_p1 = scmp.eq.s32.totalorder %s93_s23, 0  ;;  %p107_p2 = scmp.eq.s32.totalorder %s633_s19, 1 }
   0x9   : > { %p112_p3 = scmp.ne.s32.totalorder %s572_s16, %s568_s15  ;;  %p113_p4 = scmp.eq.s32.totalorder %s417_s20, 1 }
   0xa   : > { %s648_s24 = scalar_select %p94_p1, %s576_s17, %s96_s22  }
   0xb   : > { %p650_p5 = por %p107_p2, %p106_p0  ;;  %p654_p6 = por %p113_p4, %p112_p3 }
   0xc   : > { %p420_p7 = scmp.ge.s32.totalorder %s580_s18, 1  ;;  %p170_p8 = scmp.lt.s32.totalorder %s580_s18, 3 }
   0xe   : > { %p171_p9 = pnand %p420_p7, %p170_p8 }
   0xf   : > { %v205_v0 = vld [vmem:[%s762_s1] sm:$0xff] (!%p171_p9)  ;;  %p200_p10 = scmp.lt.s32.totalorder (!%p171_p9), %s633_s19, 1  ;;  %v582_v1 = vmov (!%p171_p9), 0.0   ;;  %vm583_vm0 = vmmov (!%p171_p9), 0   ;;  %vm213_vm1 = vcmask (!%p171_p9), 64512   ;;  %s669_s8 = sand.u32 (!%p171_p9), 1, %s572_s16  }
  0x10   : > { %174 = sbr.rel (%p171_p9) target bundleno = 371 (0x173), region = 32  ;;  %434 = vmatprep.subr.mxu0 (!%p171_p9), %v582_v1  ;;  %436 = vmatprep.mubr.msk.f32.mxu0 (!%p171_p9), %vm583_vm0, %v582_v1  ;;  %s421_s9 = sshll.u32 (!%p171_p9), %s669_s8, 3  ;;  %v424_v3 = vld [vmem:[%s763_s2] ss:$0 sm:$0xff] (!%p171_p9)  ;;  %vm287_vm2 = vcmask (!%p171_p9), 261120  }
  0x11   : > { %435 = vmatpush3.msra.mxu0 (!%p171_p9), %v205_v0  ;;  %s428_s12 = sshll.u32 (!%p171_p9), %s633_s19, 7  ;;  %s192_s13 = scalar_lea.vmem (!%p171_p9), [#allocation2], %s421_s9 }
  0x12   : > { %s313_s14 = sshll.u32 (!%p171_p9), %s192_s13, 4  ;;  %s683_s23 = scalar_lea.hbm (!%p171_p9), %s764_s3, %s428_s12  ;;  %s685_s14 = int_to_ptr.vmem [resolvable:$true] %s313_s14 }
  0x13   : > { %s584_s27 = smov (!%p171_p9), 96   ;;  %s295_s28 = scalar_lea.sflag (!%p171_p9), [#allocation3], %s669_s8 }
  0x17   : > { %s201_s29 = scalar_select %p200_p10, %s633_s19, 1 }
  0x19   : > { %s423_s30 = sshll.u32 %s201_s29, 3  ;;  %s486_s29 = scalar_lea.vmem %s685_s14, 128 }
  0x1a   : > { %s203_s7 = scalar_lea.vmem %s761_s0, %s423_s30  ;;  %p487_p11 = scmp.ne.s32.totalorder %s685_s14, %s486_s29 }
  0x1b   : > { %v204_v2 = vld [vmem:[%s203_s7] sm:$0xff]  ;;  %s585_s30 = smov [#allocation2]  }
  0x1c   : > { %437 = vmatmul.mubr.msk.f32.vlgmr.msra.gmra.mrb[0].mxu0 %vm213_vm1, %v204_v2  ;;  %p488_p12 = pnand %p487_p11, %p650_p5  ;;  %s490_s5 = sshll.u32 %s585_s30, 4  ;;  %s491_s5 = int_to_ptr.vmem [resolvable:$false] %s490_s5 }
  0x1d   : > { %s492_s6 = scalar_lea.vmem %s491_s5, 256  ;;  %p493_p0 = scmp.lt.s32.totalorder %s685_s14, %s491_s5 }
  0x1e   : > { %p489_p13 = pneg %p488_p12  ;;  %p494_p1 = scmp.lt.s32.totalorder %s492_s6, %s486_s29 }
  0x20   : > { %p495_p2 = por %p494_p1, %p493_p0 }
  0x22   : > { %p496_p3 = pnand %p495_p2, %p489_p13 }
  0xef   : > { %v283_v4 = vpop.f32.mrb[0].mxu0 }
  0xf0   : > { %v284_v5 = vadd.f32 %v424_v3, %v283_v4  ;;  %v438_v6 = vpop.f32.mrb[1].mxu0 }
  0xf2   : > { %290 = vrot.lane.b32.xlu0 %v284_v5, %s584_s27  ;;  %288 = vst.msk [vmem:[%s192_s13] sm:$0xff] %vm287_vm2, %v284_v5 }
  0xf3   : > { %499 = shalt.err (!%p496_p3)
}
  0xf4   : > { %s500_s7 = scalar_lea.hbm %s683_s23, 128  ;;  %s504_s13 = scalar_lea.hbm %s764_s3, 256 }
  0xf5   : > { %p501_p4 = scmp.ne.s32.totalorder %s683_s23, %s500_s7  ;;  %p505_p9 = scmp.lt.u32.totalorder %s683_s23, %s764_s3 }
  0xf6   : > { %p506_p10 = scmp.lt.u32.totalorder %s504_s13, %s500_s7  ;;  %p508_p12 = scmp.lt.u32.totalorder %s500_s7, %s683_s23 }
  0xf7   : > { %p502_p7 = pnand %p501_p4, %p650_p5 }
  0xf8   : > { %p507_p11 = por %p506_p10, %p505_p9 }
  0xf9   : > { %p503_p8 = pneg %p502_p7 }
  0xfa   : > { %p509_p13 = por %p508_p12, %p507_p11 }
  0xfc   : > { %p510_p0 = pnand %p509_p13, %p503_p8 }
  0xfe   : > { %513 = shalt.err (!%p510_p0)
}
  0xff   : > { %439 = dma.vmem_to_hbm [thread:$0]  (%p650_p5), %s685_s14, 128, %s683_s23, %s295_s28  }
 0x100   : > { %s199_s27 = scalar_lea.vmem [#allocation4], %s421_s9  ;;  %s717_s6 = scalar_lea.hbm %s765_s4, %s428_s12 }
 0x101   : > { %s326_s29 = sshll.u32 %s199_s27, 4  ;;  %s300_s7 = scalar_lea.sflag [#allocation5], %s669_s8  ;;  %s719_s29 = int_to_ptr.vmem [resolvable:$true] %s326_s29 }
 0x102   : > { %s514_s10 = scalar_lea.vmem %s719_s29, 128  ;;  %s586_s19 = smov [#allocation4]  }
 0x103   : > { %p515_p1 = scmp.ne.s32.totalorder %s719_s29, %s514_s10  ;;  %s518_s9 = sshll.u32 %s586_s19, 4  ;;  %s519_s9 = int_to_ptr.vmem [resolvable:$false] %s518_s9 }
 0x104   : > { %s520_s14 = scalar_lea.vmem %s519_s9, 256  ;;  %p521_p4 = scmp.lt.s32.totalorder %s719_s29, %s519_s9 }
 0x105   : > { %p516_p2 = pnand %p515_p1, %p650_p5  ;;  %p522_p7 = scmp.lt.s32.totalorder %s520_s14, %s514_s10 }
 0x107   : > { %p517_p3 = pneg %p516_p2  ;;  %p523_p8 = por %p522_p7, %p521_p4 }
 0x109   : > { %p524_p9 = pnand %p523_p8, %p517_p3 }
 0x164   : > { %v291_v7 = vpop.permute.xlu0 %290 }
 0x165   : > { %293 = vst.msk [vmem:[%s199_s27] sm:$0xff] %vm287_vm2, %v291_v7 }
 0x166   : > { %527 = shalt.err (!%p524_p9)
}
 0x167   : > { %s528_s8 = scalar_lea.hbm %s717_s6, 128  ;;  %s532_s28 = scalar_lea.hbm %s765_s4, 256 }
 0x168   : > { %p529_p10 = scmp.ne.s32.totalorder %s717_s6, %s528_s8  ;;  %p533_p13 = scmp.lt.u32.totalorder %s717_s6, %s765_s4 }
 0x169   : > { %p534_p0 = scmp.lt.u32.totalorder %s532_s28, %s528_s8  ;;  %p536_p2 = scmp.lt.u32.totalorder %s528_s8, %s717_s6 }
 0x16a   : > { %p530_p11 = pnand %p529_p10, %p650_p5 }
 0x16b   : > { %p535_p1 = por %p534_p0, %p533_p13 }
 0x16c   : > { %p531_p12 = pneg %p530_p11 }
 0x16d   : > { %p537_p3 = por %p536_p2, %p535_p1 }
 0x16f   : > { %p538_p4 = pnand %p537_p3, %p531_p12 }
 0x171   : > { %541 = shalt.err (!%p538_p4)
}
 0x172   : > { %440 = dma.vmem_to_hbm [thread:$0]  (%p650_p5), %s719_s29, 128, %s717_s6, %s300_s7  }
 0x173 PF: > { %p450_p7 = scmp.ge.s32.totalorder %s580_s18, 2  ;;  %s338_s20 = sand.u32 1, %s568_s15  }
 0x174   : > { %s339_s22 = scalar_lea.sflag [#allocation3], %s338_s20 }
 0x175   : > { %p444_p8 = pnand %p450_p7, %p654_p6 }
 0x177   : > { %559 = dma.done.wait (!%p444_p8), %s339_s22, 128  }
 0x178   : > { %561 = vsyncadd (!%p444_p8), %s339_s22, 4294967168  ;;  %s348_s27 = scalar_lea.sflag [#allocation5], %s338_s20 }
 0x179   : > { %563 = dma.done.wait (!%p444_p8), %s348_s27, 128  }
 0x17a   : > { %565 = vsyncadd (!%p444_p8), %s348_s27, 4294967168  ;;  %p18_p5 = scmp.ge.s32.totalorder %s637_s21, 4   ;;  %s768_s15 = smov %s572_s16 }
 0x17b   : > { %s769_s16 = smov %s576_s17  ;;  %s770_s17 = smov %s648_s24 }
 0x17c   : > { %s771_s18 = smov %s637_s21  ;;  %20 = sbr.rel (!%p18_p5) target bundleno = 5 (0x5), region = 84 }
 0x183   :  { %353 = vsyncpa [#allocation3], 1 }
 0x184   :  { %355 = vsyncpa [#allocation3 + $0x1], 1 }
 0x185   :  { %356 = vsyncpa [#allocation5], 1 }
 0x186   :  { %358 = vsyncpa [#allocation5 + $0x1], 1 }

</bundles_post_ra>
